<compile_context>
chip_gen: v7x
topology: tpu7x:2x2x1
jax: 0.10.0
libtpu: 0.0.40
codegen_flags: <defaults>
</compile_context>

<pallas_src>
import jax
import jax.numpy as jnp
from jax import lax
from jax.experimental import pallas as pl
from jax.experimental.pallas import tpu as pltpu


def _round_up(a, m):
    return (a + m - 1) // m * m


def _pick_tile(n, target, align):
    """Tile size <= target (target a multiple of `align`) minimizing pad waste."""
    n_al = _round_up(max(int(n), 1), align)
    if n_al <= target:
        return n_al
    n_tiles = -(-n_al // target)
    return _round_up(-(-n_al // n_tiles), align)


def _divisor_tile(total, target):
    """Largest multiple-of-128 divisor of `total` (a multiple of 128) <= target."""
    units = total // 128
    best = 1
    for d in range(1, units + 1):
        if units % d == 0 and d * 128 <= target:
            best = d
    return best * 128


def _vmem_limit(nbytes):
    # Explicit scoped-VMEM budget (defaults are 16 MiB on v5e / 32 MiB on
    # v6e & v7x); cap at 64 MiB so it is valid on v7x as well.
    return int(min(max(2 * nbytes, 16 * 1024 * 1024), 64 * 1024 * 1024))


# --------------------------------------------------------------------------
# Fused kernel: resident W_aug, per-N-tile x@W_aug cached in VMEM scratch.
# --------------------------------------------------------------------------
def _fused_kernel(x_ref, y_ref, w_ref, o_ref, xw_ref):
    # x_ref : (tm, Dp)  y_ref : (tn, Dp)  w_ref : (Dp, Dp)  o_ref : (tm, tn)
    # xw_ref: (tm, Dp) scratch in the compute dtype (bf16 inputs -> bf16 MXU).
    j = pl.program_id(1)

    # x @ W_aug computed once per N-tile and reused across all M-tiles.
    # NOTE: this relies on the M axis (grid axis 1) being the innermost,
    # ascending, sequential ("arbitrary") axis so that j == 0 runs before the
    # other M-tiles of the same N-tile.  Do NOT mark axis 1 "parallel" /
    # "core_parallel" (use the split path instead if M-parallelism is needed).
    @pl.when(j == 0)
    def _():
        xw_ref[...] = jnp.dot(
            x_ref[...], w_ref[...], preferred_element_type=jnp.float32
        ).astype(xw_ref.dtype)

    # (tm, Dp) x (tn, Dp) contracting the last axes -> (tm, tn); no transpose,
    # no dtype upcast (bf16 operands keep the bf16 MXU rate, f32 accumulation).
    o_ref[...] = lax.dot_general(
        xw_ref[...], y_ref[...],
        dimension_numbers=(((1,), (1,)), ((), ())),
        preferred_element_type=jnp.float32,
    ).astype(o_ref.dtype)


# --------------------------------------------------------------------------
# Split path: generic tiled matmul (A @ B or A @ B^T), f32 accumulator.
# --------------------------------------------------------------------------
def _make_matmul_kernel(transpose_b):
    def kernel(a_ref, b_ref, o_ref, acc_ref):
        k = pl.program_id(2)

        @pl.when(k == 0)
        def _():
            acc_ref[...] = jnp.zeros_like(acc_ref)

        if transpose_b:
            acc_ref[...] += lax.dot_general(
                a_ref[...], b_ref[...],
                dimension_numbers=(((1,), (1,)), ((), ())),
                preferred_element_type=jnp.float32,
            )
        else:
            acc_ref[...] += jnp.dot(
                a_ref[...], b_ref[...], preferred_element_type=jnp.float32
            )

        @pl.when(k == pl.num_programs(2) - 1)
        def _():
            o_ref[...] = acc_ref[...].astype(o_ref.dtype)

    return kernel


def _tiled_matmul(a, b_mat, *, transpose_b, out_dtype, tm, tn, tk):
    """out = a @ b_mat (or a @ b_mat.T). Dims must be multiples of the tiles."""
    m, kdim = a.shape
    n = b_mat.shape[0] if transpose_b else b_mat.shape[1]
    if transpose_b:
        b_spec = pl.BlockSpec((tn, tk), lambda i, j, k: (j, k))
    else:
        b_spec = pl.BlockSpec((tk, tn), lambda i, j, k: (k, j))

    isz = jnp.dtype(a.dtype).itemsize
    footprint = (2 * (tm * tk + tk * tn) * isz          # double-buffered inputs
                 + 2 * tm * tn * jnp.dtype(out_dtype).itemsize  # output tile
                 + tm * tn * 4)                          # f32 accumulator

    return pl.pallas_call(
        _make_matmul_kernel(transpose_b),
        out_shape=jax.ShapeDtypeStruct((m, n), out_dtype),
        grid=(m // tm, n // tn, kdim // tk),
        in_specs=[
            pl.BlockSpec((tm, tk), lambda i, j, k: (i, k)),
            b_spec,
        ],
        out_specs=pl.BlockSpec((tm, tn), lambda i, j, k: (i, j)),
        scratch_shapes=[pltpu.VMEM((tm, tn), jnp.float32)],
        compiler_params=pltpu.CompilerParams(
            dimension_semantics=("parallel", "parallel", "arbitrary"),
            vmem_limit_bytes=_vmem_limit(footprint),
        ),
    )(a, b_mat)


# --------------------------------------------------------------------------
# Public wrapper.
# --------------------------------------------------------------------------
def bilinear_critic(x, y, w, b, *, force_split=None):
    """x: (N, D), y: (M, D), w: (D, D) [PyTorch Linear weight], b: (D,) -> (N, M)."""
    N, D = x.shape
    M, D2 = y.shape
    assert D2 == D and w.shape == (D, D) and b.shape == (D,)

    dtype = jnp.result_type(x.dtype, y.dtype, w.dtype, b.dtype)
    x = x.astype(dtype)
    y = y.astype(dtype)
    w = w.astype(dtype)
    b = b.astype(dtype)
    isz = jnp.dtype(dtype).itemsize

    # Feature dim padded to lanes with one extra column used to fold the bias.
    Dp = _round_up(D + 1, 128)

    # Hoist x@W_aug out of the bilinear kernel when the resident,
    # double-buffered W_aug would dominate VMEM (large D / v7x's 64 MiB).
    w_resident_bytes = 2 * Dp * Dp * isz
    split = force_split if force_split is not None else (
        w_resident_bytes > 12 * 1024 * 1024)

    # Lane-dense output tiles; bigger tiles when the contraction strip is small
    # (small-D configs are otherwise dominated by ~0.35 us per-grid-step cost).
    if Dp <= 256:
        tgt_m, tgt_n = 512, 1024
    elif Dp <= 1024:
        tgt_m, tgt_n = 512, 512
    else:
        tgt_m, tgt_n = 256, 256
    sub = max(8, 32 // isz)                 # sublane packing: 8 f32 / 16 bf16
    tm = _pick_tile(N, tgt_m, sub)
    tn = _pick_tile(M, tgt_n, 128)

    # Fused path: only the N axis is 'parallel'; keep >= 2 N-tiles when N is
    # large enough so both v7x TensorCores get work.
    if (not split) and N >= 256 and _round_up(N, tm) // tm < 2:
        tm = _pick_tile(N, _round_up(-(-N // 2), sub), sub)

    Np = _round_up(N, tm)
    Mp = _round_up(M, tn)

    # Zero-padding of the contraction dim is exact; padded N/M rows are sliced
    # off at the end.  Bias folded as column D of W_aug / ones column of y_aug.
    xp = jnp.zeros((Np, Dp), dtype).at[:N, :D].set(x)
    y_aug = jnp.zeros((Mp, Dp), dtype).at[:M, :D].set(y).at[:M, D].set(1)
    w_aug = jnp.zeros((Dp, Dp), dtype).at[:D, :D].set(w).at[:D, D].set(b)

    if split:
        # xw_aug = x @ W_aug (tiled over rows, W columns and the reduction).
        tn_w = _divisor_tile(Dp, 512)
        tk_w = _divisor_tile(Dp, 512)
        xw = _tiled_matmul(xp, w_aug, transpose_b=False, out_dtype=dtype,
                           tm=tm, tn=tn_w, tk=tk_w)
        # out = xw_aug @ y_aug.T (A.B^T contraction, no in-kernel transpose).
        tk_o = _divisor_tile(Dp, 1024)
        out_p = _tiled_matmul(xw, y_aug, transpose_b=True, out_dtype=dtype,
                              tm=tm, tn=tn, tk=tk_o)
        return out_p[:N, :M]

    footprint = (2 * (tm + tn) * Dp * isz   # x / y strips (double-buffered)
                 + w_resident_bytes         # resident W_aug (double-buffered)
                 + 2 * tm * tn * isz        # output tile
                 + tm * Dp * isz)           # x @ W_aug scratch

    out_p = pl.pallas_call(
        _fused_kernel,
        out_shape=jax.ShapeDtypeStruct((Np, Mp), dtype),
        grid=(Np // tm, Mp // tn),
        in_specs=[
            pl.BlockSpec((tm, Dp), lambda i, j: (i, 0)),   # x strip
            pl.BlockSpec((tn, Dp), lambda i, j: (j, 0)),   # y_aug strip
            pl.BlockSpec((Dp, Dp), lambda i, j: (0, 0)),   # W_aug, resident
        ],
        out_specs=pl.BlockSpec((tm, tn), lambda i, j: (i, j)),
        scratch_shapes=[pltpu.VMEM((tm, Dp), dtype)],      # x @ W_aug cache
        compiler_params=pltpu.CompilerParams(
            # Axis 0 (N) parallel / megacore-shardable; axis 1 (M) MUST stay
            # sequential: the per-N-tile x@W_aug scratch is written at j == 0
            # and reused by every M-tile of that N-tile.
            dimension_semantics=("parallel", "arbitrary"),
            vmem_limit_bytes=_vmem_limit(footprint),
        ),
    )(xp, y_aug, w_aug)

    return out_p[:N, :M]


if __name__ == "__main__":
    dim = 32
    N, M = 8, 8

    key = jax.random.PRNGKey(0)
    kx, ky, kw, kb = jax.random.split(key, 4)

    x = jax.random.normal(kx, (N, dim), dtype=jnp.float32)
    y = jax.random.normal(ky, (M, dim), dtype=jnp.float32)
    # Deterministic synthetic Linear params (PyTorch shapes: W (dim,dim), b (dim,))
    bound = 1.0 / (dim ** 0.5)
    w = jax.random.uniform(kw, (dim, dim), minval=-bound, maxval=bound,
                           dtype=jnp.float32)
    b = jax.random.uniform(kb, (dim,), minval=-bound, maxval=bound,
                           dtype=jnp.float32)

    # Reference in plain JAX (matches PyTorch forward).
    ref = x @ (y @ w.T + b).T

    # Fused path (default for small D).
    out_fused = jax.block_until_ready(bilinear_critic(x, y, w, b))
    assert out_fused.shape == (N, M)
    assert jnp.allclose(out_fused, ref, atol=1e-4, rtol=1e-4), "fused mismatch"

    # Split (hoisted x@W) path — the large-D / v7x configuration.
    out_split = jax.block_until_ready(bilinear_critic(x, y, w, b, force_split=True))
    assert jnp.allclose(out_split, ref, atol=1e-4, rtol=1e-4), "split mismatch"

    # bf16 path: operands stay bf16 on the MXU, f32 accumulation.
    xh, yh, wh, bh = (a.astype(jnp.bfloat16) for a in (x, y, w, b))
    out_bf16 = jax.block_until_ready(bilinear_critic(xh, yh, wh, bh))
    ref_bf16 = (xh.astype(jnp.float32)
                @ (yh.astype(jnp.float32) @ wh.astype(jnp.float32).T
                   + bh.astype(jnp.float32)).T)
    assert jnp.allclose(out_bf16.astype(jnp.float32), ref_bf16,
                        atol=1e-1, rtol=1e-1), "bf16 mismatch"

    # TODO(synk): layernorm/batchnorm normalization branches of BilinearCritic
    # are not implemented (default constructor path uses a bare nn.Linear only).

    print("KERNEL_OK")
</pallas_src>

<mosaic_0001>
module attributes {stable_mosaic.version = 11 : i64} {
  func.func @_fused_kernel(%arg0: i32, %arg1: i32, %arg2: memref<8x128xf32, #tpu.memory_space<vmem>>, %arg3: memref<128x128xf32, #tpu.memory_space<vmem>>, %arg4: memref<128x128xf32, #tpu.memory_space<vmem>>, %arg5: memref<8x128xf32, #tpu.memory_space<vmem>>, %arg6: memref<8x128xf32, #tpu.memory_space<vmem>>) attributes {dimension_semantics = [#tpu.dimension_semantics<parallel>, #tpu.dimension_semantics<arbitrary>], iteration_bounds = array<i64: 1, 1>, scalar_prefetch = 0 : i64, scratch_operands = 1 : i64, tpu.core_type = #tpu.core_type<tc>, window_params = [{transform_indices = @transform_0, window_bounds = array<i64: 8, 128>}, {transform_indices = @transform_1, window_bounds = array<i64: 128, 128>}, {pipeline_mode = #tpu.pipeline_mode<synchronous>, transform_indices = @transform_2, window_bounds = array<i64: 128, 128>}, {transform_indices = @transform_3, window_bounds = array<i64: 8, 128>}]} {
    %c0_i32 = arith.constant 0 : i32
    %0 = arith.cmpi eq, %arg1, %c0_i32 : i32
    %1 = arith.extui %0 : i1 to i32
    %c0_i32_0 = arith.constant 0 : i32
    %2 = arith.cmpi ne, %1, %c0_i32_0 : i32
    scf.if %2 {
      %c0_6 = arith.constant 0 : index
      %c0_7 = arith.constant 0 : index
      %7 = vector.load %arg2[%c0_6, %c0_7] : memref<8x128xf32, #tpu.memory_space<vmem>>, vector<8x128xf32>
      %c0_8 = arith.constant 0 : index
      %c0_9 = arith.constant 0 : index
      %8 = vector.load %arg4[%c0_8, %c0_9] : memref<128x128xf32, #tpu.memory_space<vmem>>, vector<128x128xf32>
      %cst_10 = arith.constant dense<0.000000e+00> : vector<8x128xf32>
      %9 = tpu.matmul %7, %8, %cst_10 {dimension_numbers = #tpu.dot_dimension_numbers<[1], [0], [0], [1], [0, 0, 1, 1], [], []>} : vector<8x128xf32>, vector<128x128xf32>, vector<8x128xf32> -> vector<8x128xf32>
      %c0_11 = arith.constant 0 : index
      %c0_12 = arith.constant 0 : index
      %10 = vector.load %arg6[%c0_11, %c0_12] : memref<8x128xf32, #tpu.memory_space<vmem>>, vector<8x128xf32>
      tpu.vector_store %arg6[%c0_11, %c0_12], %9 {strides = array<i32>} : memref<8x128xf32, #tpu.memory_space<vmem>>, vector<8x128xf32>,
    } else {
    }
    %c0 = arith.constant 0 : index
    %c0_1 = arith.constant 0 : index
    %3 = vector.load %arg6[%c0, %c0_1] : memref<8x128xf32, #tpu.memory_space<vmem>>, vector<8x128xf32>
    %c0_2 = arith.constant 0 : index
    %c0_3 = arith.constant 0 : index
    %4 = vector.load %arg3[%c0_2, %c0_3] : memref<128x128xf32, #tpu.memory_space<vmem>>, vector<128x128xf32>
    %cst = arith.constant dense<0.000000e+00> : vector<8x128xf32>
    %5 = tpu.matmul %3, %4, %cst {dimension_numbers = #tpu.dot_dimension_numbers<[1], [1], [0], [0], [0, 0, 1, 0], [], []>} : vector<8x128xf32>, vector<128x128xf32>, vector<8x128xf32> -> vector<8x128xf32>
    %c0_4 = arith.constant 0 : index
    %c0_5 = arith.constant 0 : index
    %6 = vector.load %arg5[%c0_4, %c0_5] : memref<8x128xf32, #tpu.memory_space<vmem>>, vector<8x128xf32>
    tpu.vector_store %arg5[%c0_4, %c0_5], %5 {strides = array<i32>} : memref<8x128xf32, #tpu.memory_space<vmem>>, vector<8x128xf32>,
    return
  }
  func.func @transform_0(%arg0: i32, %arg1: i32) -> (i32, i32) {
    %c0_i32 = arith.constant 0 : i32
    %c0_i32_0 = arith.constant 0 : i32
    return %arg0, %c0_i32 : i32, i32
  }
  func.func @transform_1(%arg0: i32, %arg1: i32) -> (i32, i32) {
    %c0_i32 = arith.constant 0 : i32
    %c0_i32_0 = arith.constant 0 : i32
    return %arg1, %c0_i32 : i32, i32
  }
  func.func @transform_2(%arg0: i32, %arg1: i32) -> (i32, i32) {
    %c0_i32 = arith.constant 0 : i32
    %c0_i32_0 = arith.constant 0 : i32
    %c0_i32_1 = arith.constant 0 : i32
    return %c0_i32, %c0_i32_0 : i32, i32
  }
  func.func @transform_3(%arg0: i32, %arg1: i32) -> (i32, i32) {
    %c0_i32 = arith.constant 0 : i32
    return %arg0, %arg1 : i32, i32
  }
}

</mosaic_0001>

<bundles_post_ra>
// kernel: tpu_custom_call.1
= control target key start
LH: loop header
LB: loop body
LE: loop exit
PB: predicated region body
PF: predicated region fallthrough
CT: control target
= control target key end

     0   :  { %8 = vsyncpa [#allocation4], 0  ;;  %s604_s0 = inlined_call_operand.hbm [shape: f32[8,128], index: 0, kind: input, shape index: {}]   ;;  %s605_s1 = inlined_call_operand.hbm [shape: f32[128,128], index: 1, kind: input, shape index: {}]   ;;  %s606_s2 = inlined_call_operand.hbm [shape: f32[128,128], index: 2, kind: input, shape index: {}]   ;;  %s607_s3 = inlined_call_operand.hbm [shape: f32[8,128], index: 3, kind: output, shape index: {}]  }
   0x1   :  { %9 = vsyncpa [#allocation7], 0 }
   0x2   :  { %10 = vsyncpa [#allocation5], 0  ;;  %s505_s12 = smov [#allocation6]   ;;  %s411_s16 = scalar_lea.hbm %s605_s1, 2048 }
   0x3   :  { %s26_s13 = sshll.u32 %s505_s12, 4  ;;  %p412_p0 = scmp.ne.s32.totalorder %s605_s1, %s411_s16  ;;  %s27_s13 = int_to_ptr.vmem [resolvable:$true] %s26_s13 }
   0x4   :  { %p415_p1 = scmp.lt.u32.totalorder %s411_s16, %s605_s1 }
   0x6   :  { %p417_p2 = pnand %p415_p1, %p412_p0 }
   0x8   :  { %420 = shalt.err (!%p417_p2)
}
   0x9   :  { %s421_s21 = scalar_lea.vmem %s27_s13, 2048  ;;  %p426_p4 = scmp.lt.s32.totalorder %s27_s13, %s27_s13 }
   0xa   :  { %p422_p3 = scmp.ne.s32.totalorder %s27_s13, %s421_s21  ;;  %p427_p5 = scmp.lt.s32.totalorder %s421_s21, %s421_s21 }
   0xc   :  { %p428_p6 = por %p427_p5, %p426_p4 }
   0xe   :  { %p429_p7 = pnand %p428_p6, %p422_p3 }
  0x10   :  { %432 = shalt.err (!%p429_p7)
}
  0x11   :  { %s506_s22 = smov 128   ;;  %s507_s23 = smov 8  }
  0x12   :  { %32 = dma.hbm_to_vmem [thread:$0]  %s605_s1, 2048, %s27_s13, [#allocation7], %s506_s22, %s506_s22, %s507_s23  }
  0x13   :  { %s508_s26 = smov [#allocation3]   ;;  %s509_s28 = smov [#allocation8]  }
  0x14   :  { %s17_s27 = sshll.u32 %s508_s26, 4  ;;  %s38_s29 = sshll.u32 %s509_s28, 4  ;;  %s18_s27 = int_to_ptr.vmem [resolvable:$true] %s17_s27  ;;  %s39_s29 = int_to_ptr.vmem [resolvable:$true] %s38_s29 }
  0x15   :  { %s433_s5 = scalar_lea.hbm %s604_s0, 128 }
  0x16   :  { %p434_p8 = scmp.ne.s32.totalorder %s604_s0, %s433_s5  ;;  %p437_p9 = scmp.lt.u32.totalorder %s433_s5, %s604_s0 }
  0x18   :  { %p439_p10 = pnand %p437_p9, %p434_p8 }
  0x1a   :  { %442 = shalt.err (!%p439_p10)
}
  0x1b   :  { %s443_s1 = scalar_lea.vmem %s18_s27, 128  ;;  %p448_p12 = scmp.lt.s32.totalorder %s18_s27, %s18_s27 }
  0x1c   :  { %p444_p11 = scmp.ne.s32.totalorder %s18_s27, %s443_s1  ;;  %p449_p13 = scmp.lt.s32.totalorder %s443_s1, %s443_s1 }
  0x1e   :  { %p450_p0 = por %p449_p13, %p448_p12 }
  0x20   :  { %p451_p1 = pnand %p450_p0, %p444_p11 }
  0x22   :  { %454 = shalt.err (!%p451_p1)
}
  0x23   :  { %20 = dma.hbm_to_vmem [thread:$0]  %s604_s0, 128, %s18_s27, [#allocation4]  }
  0x24   :  { %s455_s14 = scalar_lea.hbm %s606_s2, 2048 }
  0x25   :  { %p456_p2 = scmp.ne.s32.totalorder %s606_s2, %s455_s14  ;;  %p459_p3 = scmp.lt.u32.totalorder %s455_s14, %s606_s2 }
  0x27   :  { %p461_p4 = pnand %p459_p3, %p456_p2 }
  0x29   :  { %464 = shalt.err (!%p461_p4)
}
  0x2a   :  { %s465_s19 = scalar_lea.vmem %s39_s29, 2048  ;;  %p470_p6 = scmp.lt.s32.totalorder %s39_s29, %s39_s29 }
  0x2b   :  { %p466_p5 = scmp.ne.s32.totalorder %s39_s29, %s465_s19  ;;  %p471_p7 = scmp.lt.s32.totalorder %s465_s19, %s465_s19 }
  0x2d   :  { %p472_p8 = por %p471_p7, %p470_p6 }
  0x2f   :  { %p473_p9 = pnand %p472_p8, %p466_p5 }
  0x31   :  { %476 = shalt.err (!%p473_p9)
}
  0x32   :  { %44 = dma.hbm_to_vmem [thread:$0]  %s606_s2, 2048, %s39_s29, [#allocation7], %s506_s22, %s506_s22, %s507_s23  }
  0x33   :  { %499 = dma.done.wait [#allocation4], 128  }
  0x34   :  { %500 = vsyncadd [#allocation4], 4294967168 }
  0x35   :  { %501 = dma.done.wait [#allocation7], 4096  }
  0x36   :  { %502 = vsyncadd [#allocation7], 4294963200  ;;  %v510_v0 = vmov 0.0|0.0   ;;  %vm511_vm0 = vmmov 0   ;;  %v512_v1 = vmov 0.0   ;;  %v59_v2 = vld [vmem:[#allocation8] sm:$0xff] }
  0x37   :  { %354 = vmatprep.subr.bf16.mxu0 %v510_v0  ;;  %316 = vmatprep.mubr.msk.f32.mxu0 %vm511_vm0, %v512_v1  ;;  %v60_v3 = vld [vmem:[#allocation8 + $0x8] sm:$0xff]  ;;  %v61_v4 = vld [vmem:[#allocation8 + $0x10] sm:$0xff]  ;;  %v62_v6 = vld [vmem:[#allocation8 + $0x18] sm:$0xff]  ;;  %s513_s2 = smov [#allocation9]  }
  0x38   :  { %378 = vmatprep.subr.bf16.mxu1 %v510_v0  ;;  %351 = vmatprep.mubr.msk.f32.mxu1 %vm511_vm0, %v512_v1  ;;  %v355_v5 = vpack.c.bf16 %v60_v3, %v59_v2  ;;  %v358_v7 = vpack.c.bf16 %v62_v6, %v61_v4  ;;  %v63_v8 = vld [vmem:[#allocation8 + $0x20] sm:$0xff]  ;;  %v64_v9 = vld [vmem:[#allocation8 + $0x28] sm:$0xff]  ;;  %v65_v14 = vld [vmem:[#allocation8 + $0x30] sm:$0xff]  ;;  %s240_s21 = sshll.u32 %s513_s2, 4  ;;  %s241_s21 = int_to_ptr.vmem [resolvable:$true] %s240_s21 }
  0x39   :  { %v147_v10 = vld [vmem:[#allocation6] sm:$0xff]  ;;  %v148_v11 = vld [vmem:[#allocation6 + $0x8] sm:$0xff]  ;;  %v361_v12 = vpack.c.bf16 %v64_v9, %v63_v8  ;;  %v66_v15 = vld [vmem:[#allocation8 + $0x38] sm:$0xff]  ;;  %s477_s22 = scalar_lea.vmem %s241_s21, 128  ;;  %p482_p11 = scmp.lt.s32.totalorder %s241_s21, %s241_s21 }
  0x3a   :  { %356 = vmatpush3.bf16.msra.mxu0 %v355_v5  ;;  %v379_v13 = vpack.c.bf16 %v148_v11, %v147_v10  ;;  %v149_v16 = vld [vmem:[#allocation6 + $0x10] sm:$0xff]  ;;  %v150_v17 = vld [vmem:[#allocation6 + $0x18] sm:$0xff]  ;;  %v364_v18 = vpack.c.bf16 %v66_v15, %v65_v14  ;;  %v67_v19 = vld [vmem:[#allocation8 + $0x40] sm:$0xff]  ;;  %p478_p10 = scmp.ne.s32.totalorder %s241_s21, %s477_s22  ;;  %p483_p12 = scmp.lt.s32.totalorder %s477_s22, %s477_s22 }
  0x3b   :  { %357 = vmatprep.subr.bf16.mxu0 %v510_v0  ;;  %v68_v20 = vld [vmem:[#allocation8 + $0x48] sm:$0xff]  ;;  %v382_v21 = vpack.c.bf16 %v150_v17, %v149_v16  ;;  %v69_v23 = vld [vmem:[#allocation8 + $0x50] sm:$0xff]  ;;  %v70_v24 = vld [vmem:[#allocation8 + $0x58] sm:$0xff] }
  0x3c   :  { %380 = vmatpush3.bf16.xpose.msra.mxu1 %v379_v13  ;;  %v367_v22 = vpack.c.bf16 %v68_v20, %v67_v19  ;;  %v151_v25 = vld [vmem:[#allocation6 + $0x20] sm:$0xff]  ;;  %v152_v26 = vld [vmem:[#allocation6 + $0x28] sm:$0xff]  ;;  %v370_v27 = vpack.c.bf16 %v70_v24, %v69_v23  ;;  %v73_v32 = vld [vmem:[#allocation8 + $0x70] sm:$0xff]  ;;  %p484_p13 = por %p483_p12, %p482_p11 }
  0x3d   :  { %381 = vmatprep.subr.bf16.mxu1 %v510_v0  ;;  %v71_v28 = vld [vmem:[#allocation8 + $0x60] sm:$0xff]  ;;  %v72_v29 = vld [vmem:[#allocation8 + $0x68] sm:$0xff]  ;;  %v385_v30 = vpack.c.bf16 %v152_v26, %v151_v25  ;;  %v74_v33 = vld [vmem:[#allocation8 + $0x78] sm:$0xff] }
  0x3e   :  { %359 = vmatpush3.bf16.msra.mxu0 %v358_v7  ;;  %v373_v31 = vpack.c.bf16 %v72_v29, %v71_v28  ;;  %v153_v34 = vld [vmem:[#allocation6 + $0x30] sm:$0xff]  ;;  %v154_v35 = vld [vmem:[#allocation6 + $0x38] sm:$0xff]  ;;  %v376_v36 = vpack.c.bf16 %v74_v33, %v73_v32  ;;  %v155_v39 = vld [vmem:[#allocation6 + $0x40] sm:$0xff]  ;;  %p485_p0 = pnand %p484_p13, %p478_p10 }
  0x3f   :  { %360 = vmatprep.subr.bf16.mxu0 %v510_v0  ;;  %v388_v37 = vpack.c.bf16 %v154_v35, %v153_v34  ;;  %v58_v38 = vld [vmem:[#allocation3] sm:$0xff]  ;;  %v156_v40 = vld [vmem:[#allocation6 + $0x48] sm:$0xff]  ;;  %v157_v42 = vld [vmem:[#allocation6 + $0x50] sm:$0xff] }
  0x40   :  { %v391_v41 = vpack.c.bf16 %v156_v40, %v155_v39  ;;  %v158_v43 = vld [vmem:[#allocation6 + $0x58] sm:$0xff]  ;;  %v159_v45 = vld [vmem:[#allocation6 + $0x60] sm:$0xff]  ;;  %v160_v46 = vld [vmem:[#allocation6 + $0x68] sm:$0xff] }
  0x41   :  { %v394_v44 = vpack.c.bf16 %v158_v43, %v157_v42  ;;  %v397_v47 = vpack.c.bf16 %v160_v46, %v159_v45  ;;  %v161_v48 = vld [vmem:[#allocation6 + $0x70] sm:$0xff]  ;;  %v162_v49 = vld [vmem:[#allocation6 + $0x78] sm:$0xff] }
  0x42   :  { %362 = vmatpush3.bf16.msra.mxu0 %v361_v12  ;;  %v400_v50 = vpack.c.bf16 %v162_v49, %v161_v48 }
  0x43   :  { %363 = vmatprep.subr.bf16.mxu0 %v510_v0 }
  0x44   :  { %383 = vmatpush3.bf16.xpose.msra.mxu1 %v382_v21 }
  0x45   :  { %384 = vmatprep.subr.bf16.mxu1 %v510_v0 }
  0x46   :  { %365 = vmatpush3.bf16.msra.mxu0 %v364_v18 }
  0x47   :  { %366 = vmatprep.subr.bf16.mxu0 %v510_v0 }
  0x4a   :  { %368 = vmatpush3.bf16.msra.mxu0 %v367_v22 }
  0x4b   :  { %369 = vmatprep.subr.bf16.mxu0 %v510_v0 }
  0x4c   :  { %386 = vmatpush3.bf16.xpose.msra.mxu1 %v385_v30 }
  0x4d   :  { %387 = vmatprep.subr.bf16.mxu1 %v510_v0 }
  0x4e   :  { %371 = vmatpush3.bf16.msra.mxu0 %v370_v27 }
  0x4f   :  { %372 = vmatprep.subr.bf16.mxu0 %v510_v0 }
  0x52   :  { %374 = vmatpush3.bf16.msra.mxu0 %v373_v31 }
  0x53   :  { %375 = vmatprep.subr.bf16.mxu0 %v510_v0 }
  0x54   :  { %389 = vmatpush3.bf16.xpose.msra.mxu1 %v388_v37 }
  0x55   :  { %390 = vmatprep.subr.bf16.mxu1 %v510_v0 }
  0x56   :  { %377 = vmatpush3.bf16.msra.mxu0 %v376_v36 }
  0x59   :  { %317 = vmatmul.mubr.f32.vlgmr.msra.gmra.mrb[0].mxu0 %v58_v38 }
  0x5c   :  { %392 = vmatpush3.bf16.xpose.msra.mxu1 %v391_v41 }
  0x5d   :  { %393 = vmatprep.subr.bf16.mxu1 %v510_v0 }
  0x64   :  { %395 = vmatpush3.bf16.xpose.msra.mxu1 %v394_v44 }
  0x65   :  { %396 = vmatprep.subr.bf16.mxu1 %v510_v0 }
  0x6c   :  { %398 = vmatpush3.bf16.xpose.msra.mxu1 %v397_v47 }
  0x6d   :  { %399 = vmatprep.subr.bf16.mxu1 %v510_v0 }
  0x74   :  { %401 = vmatpush3.bf16.xpose.msra.mxu1 %v400_v50 }
 0x12c   :  { %v141_v51 = vpop.f32.mrb[0].mxu0 }
 0x12d   :  { %v318_v52 = vpop.f32.mrb[1].mxu0  ;;  %352 = vmatmul.mubr.f32.vlgmr.msra.gmra.mrb[0].mxu1 %v141_v51 }
 0x200   :  { %v229_v53 = vpop.f32.mrb[0].mxu1 }
 0x201   :  { %233 = vst [vmem:[#allocation9] sm:$0xff] %v229_v53  ;;  %v353_v54 = vpop.f32.mrb[1].mxu1 }
 0x202   :  { %488 = shalt.err (!%p485_p0)
}
 0x203   :  { %s489_s25 = scalar_lea.hbm %s607_s3, 128 }
 0x204   :  { %p490_p1 = scmp.ne.s32.totalorder %s607_s3, %s489_s25  ;;  %p493_p2 = scmp.lt.u32.totalorder %s489_s25, %s607_s3 }
 0x206   :  { %p495_p3 = pnand %p493_p2, %p490_p1 }
 0x208   :  { %498 = shalt.err (!%p495_p3)
}
 0x209   :  { %243 = dma.vmem_to_hbm [thread:$0]  %s241_s21, 128, %s607_s3, [#allocation5]  }
 0x20a   :  { %503 = dma.done.wait [#allocation5], 128  }
 0x20b   :  { %504 = vsyncadd [#allocation5], 4294967168 }
 0x20c   :  { %247 = vsyncpa [#allocation4], 1 }
 0x20d   :  { %248 = vsyncpa [#allocation7], 1 }
 0x20e   :  { %249 = vsyncpa [#allocation5], 1 }

</bundles_post_ra>
